<compile_context>
chip_gen: v6e
topology: v6e:2x2x1
jax: 0.10.0
libtpu: 0.0.40
codegen_flags: <defaults>
</compile_context>

<pallas_src>
import functools

import jax
import jax.numpy as jnp
from jax.experimental import pallas as pl
from jax.experimental.pallas import tpu as pltpu

# ---------------- config (small synthetic shapes) ----------------
BATCH = 2
SEQ = 8
HIDDEN = 32          # config.hidden_size == query_size == key_dim
VOCAB = 64
NUM_TASKS = 3
PREFIX_LEN = 4
NUM_LAYERS = 2
NUM_HEADS = 4
HEAD_DIM = HIDDEN // NUM_HEADS
MID = 64             # prefix MLP bottleneck
PAD_TOKEN_ID = 0
SOFTMAX_MATCH_SCALE = 8.0

LANE = 128           # padded lane width for the fused kernel
SLAB_ROWS = 8        # sublane-aligned output slab


# ------- fused kernel: embed-gather mean (process_query) + key match + softmax -------
def _embed_query_match_kernel(ids_ref, emb_ref, kT_ref, out_ref, *, batch):
    # ids_ref: [8, S] int32 — rows 0..B-1 and B..2B-1 both hold the real batch
    #          token ids (duplicated wrapper-side), remaining rows are -1.
    # emb_ref: [VOCAB, 128] f32 — embedding table, hidden zero-padded to 128 lanes.
    # kT_ref : [128, 128] f32 — keys L2-normalized * softmax_match_scale,
    #          transposed, zero-padded in both hidden rows and task lanes.
    # out_ref: [8, 128] f32 — rows 0..B-1: x_query; rows B..2B-1: task prob.
    R, S = ids_ref.shape
    V, HP = emb_ref.shape

    ids = ids_ref[...]
    # One-hot token counts (gather expressed as a tiny matmul; VOCAB is small).
    iota_v = jax.lax.broadcasted_iota(jnp.int32, (R, S, V), 2)
    onehot = (ids[:, :, None] == iota_v).astype(jnp.float32)        # [R, S, V]
    counts = jnp.sum(onehot, axis=1)                                 # [R, V]

    # Mean over the sequence (process_query; unmasked, matching the reference).
    q = jnp.dot(counts, emb_ref[...],
                preferred_element_type=jnp.float32) * (1.0 / S)      # [R, 128]

    # Cosine similarity: only the query side needs normalizing (keys hoisted).
    inv_qnorm = jax.lax.rsqrt(
        jnp.maximum(jnp.sum(q * q, axis=-1, keepdims=True), 1e-16))  # EUP rsqrt
    qn = q * inv_qnorm
    logits = jnp.dot(qn, kT_ref[...],
                     preferred_element_type=jnp.float32)             # [R, 128]

    # Mask padded task lanes before the softmax (zero-padded keys give logit 0).
    lane = jax.lax.broadcasted_iota(jnp.int32, logits.shape, 1)
    logits = jnp.where(lane < NUM_TASKS, logits, -1e30)
    m = jnp.max(logits, axis=-1, keepdims=True)
    e = jnp.exp(logits - m)
    prob = e * pl.reciprocal(jnp.sum(e, axis=-1, keepdims=True), approx=True)

    # Single unmasked lane/sublane-dense store.
    row = jax.lax.broadcasted_iota(jnp.int32, (R, HP), 0)
    out_ref[...] = jnp.where(row < batch, q,
                             jnp.where(row < 2 * batch, prob, 0.0))


def fused_embed_query_match(source_ids, embed_pad, keysT_pad):
    B, S = source_ids.shape
    V, HP = embed_pad.shape
    assert 2 * B <= SLAB_ROWS
    pad_rows = SLAB_ROWS - 2 * B
    ids8 = jnp.concatenate(
        [source_ids, source_ids,
         jnp.full((pad_rows, S), -1, source_ids.dtype)], axis=0)      # [8, S]

    flops = 2 * SLAB_ROWS * (S * V + V * HP + HP * LANE)
    bytes_accessed = 4 * (SLAB_ROWS * S + V * HP + HP * LANE + SLAB_ROWS * LANE)

    return pl.pallas_call(
        functools.partial(_embed_query_match_kernel, batch=B),
        out_shape=jax.ShapeDtypeStruct((SLAB_ROWS, LANE), jnp.float32),
        grid=(1,),
        in_specs=[
            pl.BlockSpec((SLAB_ROWS, S), lambda i: (0, 0)),
            pl.BlockSpec((V, HP), lambda i: (0, 0)),
            pl.BlockSpec((HP, LANE), lambda i: (0, 0)),
        ],
        out_specs=pl.BlockSpec((SLAB_ROWS, LANE), lambda i: (0, 0)),
        compiler_params=pltpu.CompilerParams(
            dimension_semantics=("arbitrary",)),
        cost_estimate=pl.CostEstimate(
            flops=flops, transcendentals=SLAB_ROWS * LANE,
            bytes_accessed=bytes_accessed),
    )(ids8, embed_pad, keysT_pad)


# ---------------- kernel: prefix-tuning MLP (ALL tasks, once, at init) ----------------
def _prefix_mlp_kernel(x_ref, w1_ref, b1_ref, w2_ref, b2_ref, o_ref):
    # x: [R_pad, H] -> h: [R_pad, M] -> o: [R_pad, L*2*NH*HD]
    h = jnp.tanh(
        jnp.dot(x_ref[...], w1_ref[...], preferred_element_type=jnp.float32)
        + b1_ref[...])
    o_ref[...] = (
        jnp.dot(h, w2_ref[...], preferred_element_type=jnp.float32) + b2_ref[...])


def prefix_mlp_all_tasks(prefix_emb_flat, w1, b1, w2, b2):
    R, H = prefix_emb_flat.shape
    M = w1.shape[1]
    OUT = w2.shape[1]
    return pl.pallas_call(
        _prefix_mlp_kernel,
        out_shape=jax.ShapeDtypeStruct((R, OUT), jnp.float32),
        grid=(1,),
        in_specs=[
            pl.BlockSpec((R, H), lambda i: (0, 0)),
            pl.BlockSpec((H, M), lambda i: (0, 0)),
            pl.BlockSpec((1, M), lambda i: (0, 0)),
            pl.BlockSpec((M, OUT), lambda i: (0, 0)),
            pl.BlockSpec((1, OUT), lambda i: (0, 0)),
        ],
        out_specs=pl.BlockSpec((R, OUT), lambda i: (0, 0)),
        compiler_params=pltpu.CompilerParams(
            dimension_semantics=("arbitrary",)),
    )(prefix_emb_flat, w1, b1, w2, b2)


# ---------------- jitted forward core ----------------
@functools.partial(jax.jit, static_argnames=("id_pred_on",))
def _forward_core(embed_pad, keysT_pad, pkv_all_tasks,
                  source_ids, target_ids, task_id, *, id_pred_on=True):
    B, _ = source_ids.shape
    labels = jnp.where(target_ids == PAD_TOKEN_ID, -100, target_ids)

    # Single fused Pallas kernel: embedding gather + mean over seq
    # (process_query) + cosine key match + softmax, one (8,128) dense output.
    slab = fused_embed_query_match(source_ids, embed_pad, keysT_pad)
    x_query = slab[:B, :HIDDEN]
    prob = slab[B:2 * B, :NUM_TASKS]

    if id_pred_on:
        task_id_list = jnp.argmax(prob, axis=-1).astype(jnp.int32)
        task_id_prob = prob
    else:
        task_id_list, task_id_prob = None, None

    # get_prompt: cached prefix reparameterization for the selected task.
    pkv = pkv_all_tasks[task_id]                      # [L, 2, NH, P, HD]
    match_loss = jnp.float32(0.0)                     # non-compose branch
    past_prompt = []
    for i in range(NUM_LAYERS):
        key_val = pkv[i]                              # [2, NH, P, HD]
        prev_key = jnp.broadcast_to(
            key_val[0][None], (B, NUM_HEADS, PREFIX_LEN, HEAD_DIM))
        prev_value = jnp.broadcast_to(
            key_val[1][None], (B, NUM_HEADS, PREFIX_LEN, HEAD_DIM))
        pad_mask = jnp.zeros((B, PREFIX_LEN), jnp.bool_)
        entry = {"prev_key": prev_key,
                 "prev_value": prev_value,
                 "prev_key_padding_mask": pad_mask}
        past_prompt.append({"encoder_prompt": dict(entry),
                            "decoder_prompt": dict(entry),
                            "cross_attention_prompt": dict(entry)})

    return {"x_query": x_query,
            "pred_ids": task_id_list,
            "pred_prob": task_id_prob,
            "past_prompt": past_prompt,
            "match_loss": match_loss,
            "labels": labels}


# ---------------- module-level glue ----------------
class T5PrefixContinualPallas:
    def __init__(self, key):
        k = jax.random.split(key, 6)
        self.embed_tokens = jax.random.normal(k[0], (VOCAB, HIDDEN), jnp.float32) * 0.02
        # prefix encoder parameters (one learned prefix per task + shared MLP)
        self.prefix_emb = jax.random.normal(
            k[1], (NUM_TASKS, PREFIX_LEN, HIDDEN), jnp.float32) * 0.02
        self.w1 = jax.random.normal(k[2], (HIDDEN, MID), jnp.float32) * 0.02
        self.b1 = jnp.zeros((1, MID), jnp.float32)
        out_dim = NUM_LAYERS * 2 * NUM_HEADS * HEAD_DIM
        self.w2 = jax.random.normal(k[3], (MID, out_dim), jnp.float32) * 0.02
        self.b2 = jnp.zeros((1, out_dim), jnp.float32)
        # task keys used by the classifier_match_key branch of _get_pred_ids
        self.keys = jax.random.normal(k[4], (NUM_TASKS, HIDDEN), jnp.float32)

        # --- constant work hoisted out of the forward path ---
        # Keys: L2-normalize, fold softmax_match_scale in, transpose, zero-pad
        # to a lane-dense [128, 128] tile (padded task lanes are re-masked to
        # -inf inside the kernel before the softmax).
        kn = self.keys / jnp.maximum(
            jnp.linalg.norm(self.keys, axis=-1, keepdims=True), 1e-8)
        keysT = (kn * SOFTMAX_MATCH_SCALE).T                       # [H, T]
        self.keysT_pad = jnp.zeros((LANE, LANE), jnp.float32).at[
            :HIDDEN, :NUM_TASKS].set(keysT)

        # Embedding table zero-padded to 128 lanes so the kernel's query vector
        # is lane-dense with exact zeros in the padded lanes.
        self.embed_pad = jnp.zeros((VOCAB, LANE), jnp.float32).at[
            :, :HIDDEN].set(self.embed_tokens)

        # Precompute the prefix reparameterization for ALL tasks once
        # (task-static); rows padded 12 -> 16 for an aligned sublane store.
        R = NUM_TASKS * PREFIX_LEN
        R_pad = ((R + 7) // 8) * 8
        flat_in = jnp.zeros((R_pad, HIDDEN), jnp.float32).at[:R].set(
            self.prefix_emb.reshape(R, HIDDEN))
        flat = prefix_mlp_all_tasks(flat_in, self.w1, self.b1, self.w2, self.b2)[:R]
        # [T*P, L*2*NH*HD] -> [T, L, 2, NH, P, HD]
        pkv = flat.reshape(NUM_TASKS, PREFIX_LEN, NUM_LAYERS, 2, NUM_HEADS, HEAD_DIM)
        self.pkv_all_tasks = jnp.transpose(pkv, (0, 2, 3, 4, 1, 5))

    def forward(self, batch, task_id, train=False, final=True,
                prompt_select_mode="local_compose", id_pred_on=True):
        # TODO(synk): train branch (frozen T5 LM loss + tensorboard logging) and
        # generate() are not re-implemented; source_mask is unused because the
        # frozen query encoder is stood in by token embeddings.
        return _forward_core(
            self.embed_pad, self.keysT_pad, self.pkv_all_tasks,
            batch["source_ids"], batch["target_ids"],
            jnp.int32(task_id),
            id_pred_on=bool(final and id_pred_on))


if __name__ == "__main__":
    key = jax.random.PRNGKey(0)
    model = T5PrefixContinualPallas(key)

    kb = jax.random.split(key, 3)
    source_ids = jax.random.randint(kb[0], (BATCH, SEQ), 1, VOCAB, dtype=jnp.int32)
    source_mask = jnp.ones((BATCH, SEQ), jnp.int32)
    target_ids = jax.random.randint(kb[1], (BATCH, SEQ), 0, VOCAB, dtype=jnp.int32)
    batch = {"source_ids": source_ids, "source_mask": source_mask,
             "target_ids": target_ids}

    out = model.forward(batch, task_id=1, final=True, id_pred_on=True)
    jax.block_until_ready(out)

    # ---- sanity checks against pure-JAX references ----
    hi = jax.lax.Precision.HIGHEST
    x_embed_ref = jnp.take(model.embed_tokens, source_ids, axis=0)
    ref_q = jnp.mean(x_embed_ref, axis=1)
    assert jnp.allclose(out["x_query"], ref_q, atol=1e-4)

    qn = ref_q / jnp.maximum(jnp.linalg.norm(ref_q, axis=-1, keepdims=True), 1e-8)
    kn = model.keys / jnp.maximum(
        jnp.linalg.norm(model.keys, axis=-1, keepdims=True), 1e-8)
    ref_prob = jax.nn.softmax(
        jnp.dot(qn, kn.T, precision=hi) * SOFTMAX_MATCH_SCALE, axis=-1)
    assert jnp.allclose(out["pred_prob"], ref_prob, atol=1e-2)
    assert jnp.array_equal(out["pred_ids"],
                           jnp.argmax(ref_prob, axis=-1).astype(jnp.int32))

    h_ref = jnp.tanh(jnp.dot(model.prefix_emb.reshape(-1, HIDDEN), model.w1,
                             precision=hi) + model.b1)
    flat_ref = jnp.dot(h_ref, model.w2, precision=hi) + model.b2
    pkv_ref = jnp.transpose(
        flat_ref.reshape(NUM_TASKS, PREFIX_LEN, NUM_LAYERS, 2, NUM_HEADS, HEAD_DIM),
        (0, 2, 3, 4, 1, 5))
    assert jnp.allclose(model.pkv_all_tasks, pkv_ref, atol=1e-3)

    assert out["past_prompt"][0]["encoder_prompt"]["prev_key"].shape == (
        BATCH, NUM_HEADS, PREFIX_LEN, HEAD_DIM)
    assert out["pred_ids"].shape == (BATCH,)
    assert jnp.allclose(
        jnp.where(target_ids == PAD_TOKEN_ID, -100, target_ids), out["labels"])

    print("KERNEL_OK")
</pallas_src>

<mosaic_0001>
module attributes {stable_mosaic.version = 11 : i64} {
  func.func @_prefix_mlp_kernel(%arg0: i32, %arg1: memref<16x32xf32, #tpu.memory_space<vmem>>, %arg2: memref<32x64xf32, #tpu.memory_space<vmem>>, %arg3: memref<1x64xf32, #tpu.memory_space<vmem>>, %arg4: memref<64x128xf32, #tpu.memory_space<vmem>>, %arg5: memref<1x128xf32, #tpu.memory_space<vmem>>, %arg6: memref<16x128xf32, #tpu.memory_space<vmem>>) attributes {dimension_semantics = [#tpu.dimension_semantics<arbitrary>], iteration_bounds = array<i64: 1>, scalar_prefetch = 0 : i64, scratch_operands = 0 : i64, tpu.core_type = #tpu.core_type<tc>, window_params = [{pipeline_mode = #tpu.pipeline_mode<synchronous>, transform_indices = @transform_0, window_bounds = array<i64: 16, 32>}, {pipeline_mode = #tpu.pipeline_mode<synchronous>, transform_indices = @transform_1, window_bounds = array<i64: 32, 64>}, {pipeline_mode = #tpu.pipeline_mode<synchronous>, transform_indices = @transform_2, window_bounds = array<i64: 1, 64>}, {pipeline_mode = #tpu.pipeline_mode<synchronous>, transform_indices = @transform_3, window_bounds = array<i64: 64, 128>}, {pipeline_mode = #tpu.pipeline_mode<synchronous>, transform_indices = @transform_4, window_bounds = array<i64: 1, 128>}, {pipeline_mode = #tpu.pipeline_mode<synchronous>, transform_indices = @transform_5, window_bounds = array<i64: 16, 128>}]} {
    %c0 = arith.constant 0 : index
    %c0_0 = arith.constant 0 : index
    %0 = vector.load %arg1[%c0, %c0_0] : memref<16x32xf32, #tpu.memory_space<vmem>>, vector<16x32xf32>
    %c0_1 = arith.constant 0 : index
    %c0_2 = arith.constant 0 : index
    %1 = vector.load %arg2[%c0_1, %c0_2] : memref<32x64xf32, #tpu.memory_space<vmem>>, vector<32x64xf32>
    %cst = arith.constant dense<0.000000e+00> : vector<16x64xf32>
    %2 = tpu.matmul %0, %1, %cst {dimension_numbers = #tpu.dot_dimension_numbers<[1], [0], [0], [1], [0, 0, 1, 1], [], []>} : vector<16x32xf32>, vector<32x64xf32>, vector<16x64xf32> -> vector<16x64xf32>
    %c0_3 = arith.constant 0 : index
    %c0_4 = arith.constant 0 : index
    %3 = vector.load %arg3[%c0_3, %c0_4] : memref<1x64xf32, #tpu.memory_space<vmem>>, vector<1x64xf32>
    %4 = vector.broadcast %3 : vector<1x64xf32> to vector<16x64xf32>
    %5 = arith.addf %2, %4 : vector<16x64xf32>
    %6 = math.tanh %5 : vector<16x64xf32>
    %c0_5 = arith.constant 0 : index
    %c0_6 = arith.constant 0 : index
    %7 = vector.load %arg4[%c0_5, %c0_6] : memref<64x128xf32, #tpu.memory_space<vmem>>, vector<64x128xf32>
    %cst_7 = arith.constant dense<0.000000e+00> : vector<16x128xf32>
    %8 = tpu.matmul %6, %7, %cst_7 {dimension_numbers = #tpu.dot_dimension_numbers<[1], [0], [0], [1], [0, 0, 1, 1], [], []>} : vector<16x64xf32>, vector<64x128xf32>, vector<16x128xf32> -> vector<16x128xf32>
    %c0_8 = arith.constant 0 : index
    %c0_9 = arith.constant 0 : index
    %9 = vector.load %arg5[%c0_8, %c0_9] : memref<1x128xf32, #tpu.memory_space<vmem>>, vector<1x128xf32>
    %10 = vector.broadcast %9 : vector<1x128xf32> to vector<16x128xf32>
    %11 = arith.addf %8, %10 : vector<16x128xf32>
    %c0_10 = arith.constant 0 : index
    %c0_11 = arith.constant 0 : index
    %12 = vector.load %arg6[%c0_10, %c0_11] : memref<16x128xf32, #tpu.memory_space<vmem>>, vector<16x128xf32>
    tpu.vector_store %arg6[%c0_10, %c0_11], %11 {strides = array<i32>} : memref<16x128xf32, #tpu.memory_space<vmem>>, vector<16x128xf32>,
    return
  }
  func.func @transform_0(%arg0: i32) -> (i32, i32) {
    %c0_i32 = arith.constant 0 : i32
    %c0_i32_0 = arith.constant 0 : i32
    %c0_i32_1 = arith.constant 0 : i32
    return %c0_i32, %c0_i32_0 : i32, i32
  }
  func.func @transform_1(%arg0: i32) -> (i32, i32) {
    %c0_i32 = arith.constant 0 : i32
    %c0_i32_0 = arith.constant 0 : i32
    %c0_i32_1 = arith.constant 0 : i32
    return %c0_i32, %c0_i32_0 : i32, i32
  }
  func.func @transform_2(%arg0: i32) -> (i32, i32) {
    %c0_i32 = arith.constant 0 : i32
    %c0_i32_0 = arith.constant 0 : i32
    %c0_i32_1 = arith.constant 0 : i32
    return %c0_i32, %c0_i32_0 : i32, i32
  }
  func.func @transform_3(%arg0: i32) -> (i32, i32) {
    %c0_i32 = arith.constant 0 : i32
    %c0_i32_0 = arith.constant 0 : i32
    %c0_i32_1 = arith.constant 0 : i32
    return %c0_i32, %c0_i32_0 : i32, i32
  }
  func.func @transform_4(%arg0: i32) -> (i32, i32) {
    %c0_i32 = arith.constant 0 : i32
    %c0_i32_0 = arith.constant 0 : i32
    %c0_i32_1 = arith.constant 0 : i32
    return %c0_i32, %c0_i32_0 : i32, i32
  }
  func.func @transform_5(%arg0: i32) -> (i32, i32) {
    %c0_i32 = arith.constant 0 : i32
    %c0_i32_0 = arith.constant 0 : i32
    %c0_i32_1 = arith.constant 0 : i32
    return %c0_i32, %c0_i32_0 : i32, i32
  }
}

</mosaic_0001>

<bundles_post_ra>
// kernel: tpu_custom_call.1
= control target key start
LH: loop header
LB: loop body
LE: loop exit
PB: predicated region body
PF: predicated region fallthrough
CT: control target
= control target key end

     0   :  { %10 = vsyncpa [#allocation3], 0  ;;  %s492_s0 = inlined_call_operand.hbm [shape: f32[16,32], index: 0, kind: input, shape index: {}]   ;;  %s493_s1 = inlined_call_operand.hbm [shape: f32[32,64], index: 1, kind: input, shape index: {}]   ;;  %s494_s2 = inlined_call_operand.vmem [shape: f32[1,64], index: 2, kind: input, shape index: {}]   ;;  %s495_s3 = inlined_call_operand.hbm [shape: f32[64,128], index: 3, kind: input, shape index: {}]   ;;  %s496_s4 = inlined_call_operand.vmem [shape: f32[1,128], index: 4, kind: input, shape index: {}]   ;;  %s497_s5 = inlined_call_operand.hbm [shape: f32[16,128], index: 5, kind: output, shape index: {}]  }
   0x1   :  { %11 = vsyncpa [#allocation6], 0 }
   0x2   :  { %12 = vsyncpa [#allocation4], 0  ;;  %s424_s18 = smov [#allocation5]   ;;  %s425_s20 = smov [#allocation2]  }
   0x3   :  { %s30_s19 = sshll.u32 %s424_s18, 4  ;;  %s18_s21 = sshll.u32 %s425_s20, 4  ;;  %s31_s19 = int_to_ptr.vmem [resolvable:$true] %s30_s19  ;;  %s19_s21 = int_to_ptr.vmem [resolvable:$true] %s18_s21 }
   0x4   :  { %s346_s22 = scalar_lea.vmem %s31_s19, 512  ;;  %p351_p1 = scmp.lt.s32.totalorder %s31_s19, %s31_s19 }
   0x5   :  { %p347_p0 = scmp.ne.s32.totalorder %s31_s19, %s346_s22  ;;  %p352_p2 = scmp.lt.s32.totalorder %s346_s22, %s346_s22 }
   0x7   :  { %p353_p3 = por %p352_p2, %p351_p1 }
   0x9   :  { %p354_p4 = pnand %p353_p3, %p347_p0 }
   0xb   :  { %357 = shalt.err (!%p354_p4)
}
   0xc   :  { %s426_s23 = smov 128   ;;  %s427_s24 = smov 8  }
   0xd   :  { %36 = dma.hbm_to_vmem [thread:$0]  %s493_s1, 512, %s31_s19, [#allocation6], %s426_s23, %s426_s23, %s427_s24  }
   0xe   :  { %s366_s27 = scalar_lea.vmem %s19_s21, 256  ;;  %p371_p6 = scmp.lt.s32.totalorder %s19_s21, %s19_s21 }
   0xf   :  { %p367_p5 = scmp.ne.s32.totalorder %s19_s21, %s366_s27  ;;  %p372_p7 = scmp.lt.s32.totalorder %s366_s27, %s366_s27 }
  0x11   :  { %p373_p8 = por %p372_p7, %p371_p6 }
  0x13   :  { %p374_p9 = pnand %p373_p8, %p367_p5 }
  0x15   :  { %377 = shalt.err (!%p374_p9)
}
  0x16   :  { %24 = dma.hbm_to_vmem [thread:$0]  %s492_s0, 256, %s19_s21, [#allocation3], %s426_s23, %s426_s23, %s427_s24  }
  0x17   :  { %s428_s30 = smov [#allocation7]  }
  0x18   :  { %s44_s6 = sshll.u32 %s428_s30, 4  ;;  %s45_s6 = int_to_ptr.vmem [resolvable:$true] %s44_s6 }
  0x19   :  { %s386_s7 = scalar_lea.vmem %s45_s6, 1024  ;;  %p391_p11 = scmp.lt.s32.totalorder %s45_s6, %s45_s6 }
  0x1a   :  { %p387_p10 = scmp.ne.s32.totalorder %s45_s6, %s386_s7  ;;  %p392_p12 = scmp.lt.s32.totalorder %s386_s7, %s386_s7 }
  0x1c   :  { %p393_p13 = por %p392_p12, %p391_p11 }
  0x1e   :  { %p394_p0 = pnand %p393_p13, %p387_p10 }
  0x20   :  { %397 = shalt.err (!%p394_p0)
}
  0x21   :  { %50 = dma.hbm_to_vmem [thread:$0]  %s495_s3, 1024, %s45_s6, [#allocation6], %s426_s23, %s426_s23, %s427_s24  }
  0x22   :  { %418 = dma.done.wait [#allocation3], 256  }
  0x23   :  { %419 = vsyncadd [#allocation3], 4294967040 }
  0x24   :  { %420 = dma.done.wait [#allocation6], 1536  }
  0x25   :  { %421 = vsyncadd [#allocation6], 4294965760  ;;  %vm75_vm0 = vcmask 261120   ;;  %v67_v0 = vld [vmem:[#allocation5 + $0x18] sm:$0xff]  ;;  %v66_v1 = vld [vmem:[#allocation5 + $0x10] sm:$0xff]  ;;  %vm174_vm1 = vcmask 523264  }
  0x26   :  { %298 = vmatprep.subr.mxu0 %v67_v0  ;;  %v62_v2 = vld [vmem:[#allocation2] sm:$0xff]  ;;  %v65_v3 = vld [vmem:[#allocation5 + $0x8] sm:$0xff]  ;;  %v64_v4 = vld [vmem:[#allocation5] sm:$0xff]  ;;  %s429_s11 = smov [#allocation8]  }
  0x27   :  { %299 = vmatpush3.msra.mxu0 %v67_v0  ;;  %306 = vmatprep.mubr.msk.f32.mxu0 %vm75_vm0, %v62_v2  ;;  %v63_v5 = vld [vmem:[#allocation2 + $0x8] sm:$0xff]  ;;  %v165_v7 = vld [vmem:[#allocation7 + $0x30] sm:$0xff]  ;;  %v164_v8 = vld [vmem:[#allocation7 + $0x28] sm:$0xff]  ;;  %s263_s12 = sshll.u32 %s429_s11, 4  ;;  %s264_s12 = int_to_ptr.vmem [resolvable:$true] %s263_s12 }
  0x28   :  { %300 = vmatprep.subr.mxu0 %v66_v1  ;;  %v166_v6 = vld [vmem:[#allocation7 + $0x38] sm:$0xff]  ;;  %v163_v9 = vld [vmem:[#allocation7 + $0x20] sm:$0xff]  ;;  %v161_v11 = vld [vmem:[#allocation7 + $0x10] sm:$0xff]  ;;  %p403_p2 = scmp.lt.s32.totalorder %s264_s12, %s264_s12 }
  0x29   :  { %301 = vmatpush3.msra.mxu0 %v66_v1  ;;  %309 = vmatprep.subr.mxu1 %v166_v6  ;;  %v162_v10 = vld [vmem:[#allocation7 + $0x18] sm:$0xff]  ;;  %v160_v12 = vld [vmem:[#allocation7 + $0x8] sm:$0xff]  ;;  %v159_v13 = vld [vmem:[#allocation7] sm:$0xff] }
  0x2a   :  { %302 = vmatprep.subr.mxu0 %v65_v3  ;;  %310 = vmatpush3.msra.mxu1 %v166_v6  ;;  %v276_v14 = vld [vmem:[%s494_s2] ss:$0 sm:$0xff]  ;;  %s398_s2 = scalar_lea.vmem %s264_s12, 256 }
  0x2b   :  { %303 = vmatpush3.msra.mxu0 %v65_v3  ;;  %311 = vmatprep.subr.mxu1 %v165_v7  ;;  %v279_v21 = vld [vmem:[%s496_s4] ss:$0 sm:$0xff]  ;;  %p399_p1 = scmp.ne.s32.totalorder %s264_s12, %s398_s2  ;;  %p404_p3 = scmp.lt.s32.totalorder %s398_s2, %s398_s2 }
  0x2c   :  { %304 = vmatprep.subr.mxu0 %v64_v4  ;;  %312 = vmatpush3.msra.mxu1 %v165_v7 }
  0x2d   :  { %305 = vmatpush3.msra.mxu0 %v64_v4  ;;  %313 = vmatprep.subr.mxu1 %v164_v8  ;;  %p405_p4 = por %p404_p3, %p403_p2 }
  0x2e   :  { %307 = vmatmul.mubr.msk.f32.vlgmr.msra.gmra.mxu0 %vm75_vm0, %v63_v5  ;;  %314 = vmatpush3.msra.mxu1 %v164_v8 }
  0x2f   :  { %315 = vmatprep.subr.mxu1 %v163_v9  ;;  %p406_p5 = pnand %p405_p4, %p399_p1 }
  0x30   :  { %316 = vmatpush3.msra.mxu1 %v163_v9 }
  0x31   :  { %317 = vmatprep.subr.mxu1 %v162_v10 }
  0x32   :  { %318 = vmatpush3.msra.mxu1 %v162_v10 }
  0x33   :  { %319 = vmatprep.subr.mxu1 %v161_v11 }
  0x34   :  { %320 = vmatpush3.msra.mxu1 %v161_v11 }
  0x35   :  { %321 = vmatprep.subr.mxu1 %v160_v12 }
  0x36   :  { %322 = vmatpush3.msra.mxu1 %v160_v12 }
  0x37   :  { %323 = vmatprep.subr.mxu1 %v159_v13 }
  0x38   :  { %324 = vmatpush3.msra.mxu1 %v159_v13 }
  0xee   :  { %v308_v15 = vpop.f32.mrf.mxu0 }
  0xef   :  { %v154_v16 = vadd.f32 %v308_v15, %v276_v14 }
  0xf0   :  { %v148_v17 = vpop.f32.mrf.mxu0 }
  0xf1   :  { %v149_v18 = vadd.f32 %v276_v14, %v148_v17 }
  0xf3   :  { %334 = vtanh.f32 %v149_v18 }
  0xf4   :  { %336 = vtanh.f32 %v154_v16 }
 0x100   :  { %v335_v19 = vpop.eup %334 }
 0x101   :  { %v337_v20 = vpop.eup %336  ;;  %325 = vmatprep.mubr.msk.f32.mxu1 %vm174_vm1, %v335_v19 }
 0x102   :  { %326 = vmatmul.mubr.msk.f32.vlgmr.msra.gmra.mxu1 %vm174_vm1, %v337_v20 }
 0x1c2   :  { %v327_v22 = vpop.f32.mrf.mxu1 }
 0x1c3   :  { %v253_v23 = vadd.f32 %v327_v22, %v279_v21 }
 0x1c4   :  { %v247_v24 = vpop.f32.mrf.mxu1 }
 0x1c5   :  { %257 = vst [vmem:[#allocation8 + $0x8] sm:$0xff] %v253_v23  ;;  %v248_v25 = vadd.f32 %v279_v21, %v247_v24 }
 0x1c7   :  { %256 = vst [vmem:[#allocation8] sm:$0xff] %v248_v25 }
 0x1c8   :  { %409 = shalt.err (!%p406_p5)
}
 0x1c9   :  { %269 = dma.vmem_to_hbm [thread:$0]  %s264_s12, 256, %s497_s5, [#allocation4], %s426_s23, %s426_s23, %s427_s24  }
 0x1ca   :  { %422 = dma.done.wait [#allocation4], 256  }
 0x1cb   :  { %423 = vsyncadd [#allocation4], 4294967040 }
 0x1cc   :  { %273 = vsyncpa [#allocation3], 1 }
 0x1cd   :  { %274 = vsyncpa [#allocation6], 1 }
 0x1ce   :  { %275 = vsyncpa [#allocation4], 1 }

</bundles_post_ra>
